<compile_context>
chip_gen: v5e
topology: v5e:2x2
jax: 0.10.0
libtpu: 0.0.40
codegen_flags: <defaults>
</compile_context>

<pallas_src>
import functools

import jax
import jax.numpy as jnp
from jax.experimental import pallas as pl
from jax.experimental.pallas import tpu as pltpu


LANE = 128


def _round_up(x, m):
    return (x + m - 1) // m * m


def _mlp_kernel(x_ref, w0_ref, b0_ref, w1_ref, b1_ref, w2_ref, b2_ref,
                wc_ref, bc_ref, x0_ref, y_ref, *, hidden, out_features):
    # bf16 operands on the MXU, f32 accumulation, f32 bias/ReLU epilogue.
    x = x_ref[...]                                       # already bf16

    # layer0 + relu0 (this activation is also the first returned output)
    h0 = jnp.dot(x, w0_ref[...], preferred_element_type=jnp.float32) + b0_ref[...]
    h0 = jnp.maximum(h0, 0.0)
    x0_ref[...] = h0[:, :hidden].astype(x0_ref.dtype)    # true-width store

    # layer1 + relu1
    h1 = jnp.dot(h0.astype(jnp.bfloat16), w1_ref[...],
                 preferred_element_type=jnp.float32) + b1_ref[...]
    h1 = jnp.maximum(h1, 0.0)

    # layer2 + relu2
    h2 = jnp.dot(h1.astype(jnp.bfloat16), w2_ref[...],
                 preferred_element_type=jnp.float32) + b2_ref[...]
    h2 = jnp.maximum(h2, 0.0)

    # classifier (no activation); compute 128 padded lanes, store only `out`.
    y = jnp.dot(h2.astype(jnp.bfloat16), wc_ref[...],
                preferred_element_type=jnp.float32) + bc_ref[...]
    y_ref[...] = y[:, :out_features].astype(y_ref.dtype)


def pack_params(params, hidden, out_features):
    """Zero-pad weight/bias lane dims to multiples of 128; weights -> bf16.

    Padded weight columns / rows and padded bias entries are exactly zero, so
    ReLU of padded lanes stays zero and the narrow stores are exact.
    """
    hp = _round_up(hidden, LANE)
    op = _round_up(out_features, LANE)

    def pad_w(w, out_pad, in_pad=None):
        fi, fo = w.shape
        in_pad = fi if in_pad is None else in_pad
        wp = jnp.zeros((in_pad, out_pad), jnp.float32)
        wp = wp.at[:fi, :fo].set(w)
        return wp.astype(jnp.bfloat16)

    def pad_b(b, out_pad):
        bp = jnp.zeros((1, out_pad), jnp.float32)
        return bp.at[:, :b.shape[1]].set(b)

    return dict(
        w0=pad_w(params["w0"], hp),            b0=pad_b(params["b0"], hp),
        w1=pad_w(params["w1"], hp, in_pad=hp), b1=pad_b(params["b1"], hp),
        w2=pad_w(params["w2"], hp, in_pad=hp), b2=pad_b(params["b2"], hp),
        wc=pad_w(params["wc"], op, in_pad=hp), bc=pad_b(params["bc"], op),
    )


@functools.partial(jax.jit, static_argnames=("hidden", "out_features"))
def simple_linear_net(x, packed, *, hidden, out_features):
    """x: (B, F) float32. packed: output of pack_params. Returns (x0, y)."""
    B, F = x.shape

    # bf16 input stream -> half the x HBM bytes (bf16 operand recipe anyway).
    x = x.astype(jnp.bfloat16)

    if B <= 256:
        # Tiny/small batch: single tile, no batch padding, no output slicing.
        # (block == full array dim is legal for any B; grid=(1,) — the
        #  megacore split only matters at larger batch sizes.)
        TM, Bp = B, B
    else:
        # >= 2 grid iterations so both v7x TCs get work; TM multiple of 256
        # (amortizes the ~0.35 us per-grid-step overhead), capped at 1024.
        half = (B + 1) // 2
        TM = min(1024, _round_up(half, 256))
        Bp = _round_up(B, TM)
        if Bp != B:
            x = jnp.pad(x, ((0, Bp - B), (0, 0)))

    full2d = lambda a: pl.BlockSpec(a.shape, lambda i: (0, 0))
    args = (x, packed["w0"], packed["b0"], packed["w1"], packed["b1"],
            packed["w2"], packed["b2"], packed["wc"], packed["bc"])

    kernel = functools.partial(_mlp_kernel, hidden=hidden,
                               out_features=out_features)

    x0_p, y_p = pl.pallas_call(
        kernel,
        out_shape=(
            jax.ShapeDtypeStruct((Bp, hidden), jnp.float32),        # x0
            jax.ShapeDtypeStruct((Bp, out_features), jnp.float32),  # y
        ),
        grid=(Bp // TM,),
        in_specs=[pl.BlockSpec((TM, F), lambda i: (i, 0))]
                 + [full2d(a) for a in args[1:]],
        out_specs=(
            pl.BlockSpec((TM, hidden), lambda i: (i, 0)),
            pl.BlockSpec((TM, out_features), lambda i: (i, 0)),
        ),
        compiler_params=pltpu.CompilerParams(
            dimension_semantics=("parallel",)),
    )(*args)

    if Bp != B:
        return x0_p[:B], y_p[:B]
    return x0_p, y_p


def init_params(key, in_features, hidden, out_features):
    """PyTorch-style uniform(-1/sqrt(fan_in), 1/sqrt(fan_in)) init.
    Weights stored as (in, out) = transpose of nn.Linear's (out, in)."""
    def linear(k, fan_in, fan_out):
        kw, kb = jax.random.split(k)
        bound = 1.0 / jnp.sqrt(fan_in)
        w = jax.random.uniform(kw, (fan_in, fan_out), jnp.float32, -bound, bound)
        b = jax.random.uniform(kb, (1, fan_out), jnp.float32, -bound, bound)
        return w, b

    k0, k1, k2, kc = jax.random.split(key, 4)
    w0, b0 = linear(k0, in_features, hidden)
    w1, b1 = linear(k1, hidden, hidden)
    w2, b2 = linear(k2, hidden, hidden)
    wc, bc = linear(kc, hidden, out_features)
    return dict(w0=w0, b0=b0, w1=w1, b1=b1, w2=w2, b2=b2, wc=wc, bc=bc)


if __name__ == "__main__":
    key = jax.random.PRNGKey(0)
    kx, kp = jax.random.split(key)

    # MNIST-ish small shapes: batch=8, input image 1x8x8 -> 64 features,
    # hidden=32, 10 classes.
    B, C, Hh, Ww = 8, 1, 8, 8
    in_features = C * Hh * Ww
    hidden, out_features = 32, 10

    x_img = jax.random.normal(kx, (B, C, Hh, Ww), jnp.float32)   # NCHW, like PyTorch
    x = x_img.reshape(B, -1)                                     # = x.view(B, -1)

    params = init_params(kp, in_features, hidden, out_features)
    packed = pack_params(params, hidden, out_features)

    x0, y = simple_linear_net(x, packed, hidden=hidden, out_features=out_features)
    jax.block_until_ready((x0, y))
    assert x0.shape == (B, hidden) and y.shape == (B, out_features)

    # Reference with the same bf16-operand / f32-accumulation recipe.
    def dot16(a, w):
        return jnp.dot(a.astype(jnp.bfloat16), w.astype(jnp.bfloat16),
                       preferred_element_type=jnp.float32)
    r0 = jnp.maximum(dot16(x,  params["w0"]) + params["b0"], 0.0)
    r1 = jnp.maximum(dot16(r0, params["w1"]) + params["b1"], 0.0)
    r2 = jnp.maximum(dot16(r1, params["w2"]) + params["b2"], 0.0)
    ry = dot16(r2, params["wc"]) + params["bc"]
    assert jnp.allclose(x0, r0, atol=1e-3, rtol=1e-3), "x0 mismatch"
    assert jnp.allclose(y, ry, atol=1e-3, rtol=1e-3), "y mismatch"

    # Sanity vs. pure-f32 reference (bf16 operand rounding only).
    f0 = jnp.maximum(x @ params["w0"] + params["b0"], 0.0)
    f1 = jnp.maximum(f0 @ params["w1"] + params["b1"], 0.0)
    f2 = jnp.maximum(f1 @ params["w2"] + params["b2"], 0.0)
    fy = f2 @ params["wc"] + params["bc"]
    assert jnp.allclose(y, fy, atol=5e-2, rtol=5e-2), "y far from f32 reference"

    print("KERNEL_OK")
</pallas_src>

<mosaic_0001>
module attributes {stable_mosaic.version = 11 : i64} {
  func.func @_mlp_kernel(%arg0: i32, %arg1: memref<8x64xbf16, #tpu.memory_space<vmem>>, %arg2: memref<64x128xbf16, #tpu.memory_space<vmem>>, %arg3: memref<1x128xf32, #tpu.memory_space<vmem>>, %arg4: memref<128x128xbf16, #tpu.memory_space<vmem>>, %arg5: memref<1x128xf32, #tpu.memory_space<vmem>>, %arg6: memref<128x128xbf16, #tpu.memory_space<vmem>>, %arg7: memref<1x128xf32, #tpu.memory_space<vmem>>, %arg8: memref<128x128xbf16, #tpu.memory_space<vmem>>, %arg9: memref<1x128xf32, #tpu.memory_space<vmem>>, %arg10: memref<8x32xf32, #tpu.memory_space<vmem>>, %arg11: memref<8x10xf32, #tpu.memory_space<vmem>>) attributes {dimension_semantics = [#tpu.dimension_semantics<parallel>], iteration_bounds = array<i64: 1>, scalar_prefetch = 0 : i64, scratch_operands = 0 : i64, tpu.core_type = #tpu.core_type<tc>, window_params = [{transform_indices = @transform_0, window_bounds = array<i64: 8, 64>}, {pipeline_mode = #tpu.pipeline_mode<synchronous>, transform_indices = @transform_1, window_bounds = array<i64: 64, 128>}, {pipeline_mode = #tpu.pipeline_mode<synchronous>, transform_indices = @transform_2, window_bounds = array<i64: 1, 128>}, {pipeline_mode = #tpu.pipeline_mode<synchronous>, transform_indices = @transform_3, window_bounds = array<i64: 128, 128>}, {pipeline_mode = #tpu.pipeline_mode<synchronous>, transform_indices = @transform_4, window_bounds = array<i64: 1, 128>}, {pipeline_mode = #tpu.pipeline_mode<synchronous>, transform_indices = @transform_5, window_bounds = array<i64: 128, 128>}, {pipeline_mode = #tpu.pipeline_mode<synchronous>, transform_indices = @transform_6, window_bounds = array<i64: 1, 128>}, {pipeline_mode = #tpu.pipeline_mode<synchronous>, transform_indices = @transform_7, window_bounds = array<i64: 128, 128>}, {pipeline_mode = #tpu.pipeline_mode<synchronous>, transform_indices = @transform_8, window_bounds = array<i64: 1, 128>}, {transform_indices = @transform_9, window_bounds = array<i64: 8, 32>}, {transform_indices = @transform_10, window_bounds = array<i64: 8, 10>}]} {
    %c0 = arith.constant 0 : index
    %c0_0 = arith.constant 0 : index
    %0 = vector.load %arg1[%c0, %c0_0] : memref<8x64xbf16, #tpu.memory_space<vmem>>, vector<8x64xbf16>
    %c0_1 = arith.constant 0 : index
    %c0_2 = arith.constant 0 : index
    %1 = vector.load %arg2[%c0_1, %c0_2] : memref<64x128xbf16, #tpu.memory_space<vmem>>, vector<64x128xbf16>
    %cst = arith.constant dense<0.000000e+00> : vector<8x128xf32>
    %2 = tpu.matmul %0, %1, %cst {dimension_numbers = #tpu.dot_dimension_numbers<[1], [0], [0], [1], [0, 0, 1, 1], [], []>} : vector<8x64xbf16>, vector<64x128xbf16>, vector<8x128xf32> -> vector<8x128xf32>
    %c0_3 = arith.constant 0 : index
    %c0_4 = arith.constant 0 : index
    %3 = vector.load %arg3[%c0_3, %c0_4] : memref<1x128xf32, #tpu.memory_space<vmem>>, vector<1x128xf32>
    %4 = vector.broadcast %3 : vector<1x128xf32> to vector<8x128xf32>
    %5 = arith.addf %2, %4 : vector<8x128xf32>
    %cst_5 = arith.constant 0.000000e+00 : f32
    %6 = vector.broadcast %cst_5 : f32 to vector<8x128xf32>
    %7 = arith.maximumf %5, %6 : vector<8x128xf32>
    %8 = vector.extract_strided_slice %7 {offsets = [0, 0], sizes = [8, 32], strides = [1, 1]} : vector<8x128xf32> to vector<8x32xf32>
    %c0_6 = arith.constant 0 : index
    %c0_7 = arith.constant 0 : index
    %9 = vector.load %arg10[%c0_6, %c0_7] : memref<8x32xf32, #tpu.memory_space<vmem>>, vector<8x32xf32>
    tpu.vector_store %arg10[%c0_6, %c0_7], %8 {strides = array<i32>} : memref<8x32xf32, #tpu.memory_space<vmem>>, vector<8x32xf32>,
    %10 = arith.truncf %7 : vector<8x128xf32> to vector<8x128xbf16>
    %c0_8 = arith.constant 0 : index
    %c0_9 = arith.constant 0 : index
    %11 = vector.load %arg4[%c0_8, %c0_9] : memref<128x128xbf16, #tpu.memory_space<vmem>>, vector<128x128xbf16>
    %cst_10 = arith.constant dense<0.000000e+00> : vector<8x128xf32>
    %12 = tpu.matmul %10, %11, %cst_10 {dimension_numbers = #tpu.dot_dimension_numbers<[1], [0], [0], [1], [0, 0, 1, 1], [], []>} : vector<8x128xbf16>, vector<128x128xbf16>, vector<8x128xf32> -> vector<8x128xf32>
    %c0_11 = arith.constant 0 : index
    %c0_12 = arith.constant 0 : index
    %13 = vector.load %arg5[%c0_11, %c0_12] : memref<1x128xf32, #tpu.memory_space<vmem>>, vector<1x128xf32>
    %14 = vector.broadcast %13 : vector<1x128xf32> to vector<8x128xf32>
    %15 = arith.addf %12, %14 : vector<8x128xf32>
    %cst_13 = arith.constant 0.000000e+00 : f32
    %16 = vector.broadcast %cst_13 : f32 to vector<8x128xf32>
    %17 = arith.maximumf %15, %16 : vector<8x128xf32>
    %18 = arith.truncf %17 : vector<8x128xf32> to vector<8x128xbf16>
    %c0_14 = arith.constant 0 : index
    %c0_15 = arith.constant 0 : index
    %19 = vector.load %arg6[%c0_14, %c0_15] : memref<128x128xbf16, #tpu.memory_space<vmem>>, vector<128x128xbf16>
    %cst_16 = arith.constant dense<0.000000e+00> : vector<8x128xf32>
    %20 = tpu.matmul %18, %19, %cst_16 {dimension_numbers = #tpu.dot_dimension_numbers<[1], [0], [0], [1], [0, 0, 1, 1], [], []>} : vector<8x128xbf16>, vector<128x128xbf16>, vector<8x128xf32> -> vector<8x128xf32>
    %c0_17 = arith.constant 0 : index
    %c0_18 = arith.constant 0 : index
    %21 = vector.load %arg7[%c0_17, %c0_18] : memref<1x128xf32, #tpu.memory_space<vmem>>, vector<1x128xf32>
    %22 = vector.broadcast %21 : vector<1x128xf32> to vector<8x128xf32>
    %23 = arith.addf %20, %22 : vector<8x128xf32>
    %cst_19 = arith.constant 0.000000e+00 : f32
    %24 = vector.broadcast %cst_19 : f32 to vector<8x128xf32>
    %25 = arith.maximumf %23, %24 : vector<8x128xf32>
    %26 = arith.truncf %25 : vector<8x128xf32> to vector<8x128xbf16>
    %c0_20 = arith.constant 0 : index
    %c0_21 = arith.constant 0 : index
    %27 = vector.load %arg8[%c0_20, %c0_21] : memref<128x128xbf16, #tpu.memory_space<vmem>>, vector<128x128xbf16>
    %cst_22 = arith.constant dense<0.000000e+00> : vector<8x128xf32>
    %28 = tpu.matmul %26, %27, %cst_22 {dimension_numbers = #tpu.dot_dimension_numbers<[1], [0], [0], [1], [0, 0, 1, 1], [], []>} : vector<8x128xbf16>, vector<128x128xbf16>, vector<8x128xf32> -> vector<8x128xf32>
    %c0_23 = arith.constant 0 : index
    %c0_24 = arith.constant 0 : index
    %29 = vector.load %arg9[%c0_23, %c0_24] : memref<1x128xf32, #tpu.memory_space<vmem>>, vector<1x128xf32>
    %30 = vector.broadcast %29 : vector<1x128xf32> to vector<8x128xf32>
    %31 = arith.addf %28, %30 : vector<8x128xf32>
    %32 = vector.extract_strided_slice %31 {offsets = [0, 0], sizes = [8, 10], strides = [1, 1]} : vector<8x128xf32> to vector<8x10xf32>
    %c0_25 = arith.constant 0 : index
    %c0_26 = arith.constant 0 : index
    %33 = vector.load %arg11[%c0_25, %c0_26] : memref<8x10xf32, #tpu.memory_space<vmem>>, vector<8x10xf32>
    tpu.vector_store %arg11[%c0_25, %c0_26], %32 {strides = array<i32>} : memref<8x10xf32, #tpu.memory_space<vmem>>, vector<8x10xf32>,
    return
  }
  func.func @transform_0(%arg0: i32) -> (i32, i32) {
    %c0_i32 = arith.constant 0 : i32
    %c0_i32_0 = arith.constant 0 : i32
    return %arg0, %c0_i32 : i32, i32
  }
  func.func @transform_1(%arg0: i32) -> (i32, i32) {
    %c0_i32 = arith.constant 0 : i32
    %c0_i32_0 = arith.constant 0 : i32
    %c0_i32_1 = arith.constant 0 : i32
    return %c0_i32, %c0_i32_0 : i32, i32
  }
  func.func @transform_2(%arg0: i32) -> (i32, i32) {
    %c0_i32 = arith.constant 0 : i32
    %c0_i32_0 = arith.constant 0 : i32
    %c0_i32_1 = arith.constant 0 : i32
    return %c0_i32, %c0_i32_0 : i32, i32
  }
  func.func @transform_3(%arg0: i32) -> (i32, i32) {
    %c0_i32 = arith.constant 0 : i32
    %c0_i32_0 = arith.constant 0 : i32
    %c0_i32_1 = arith.constant 0 : i32
    return %c0_i32, %c0_i32_0 : i32, i32
  }
  func.func @transform_4(%arg0: i32) -> (i32, i32) {
    %c0_i32 = arith.constant 0 : i32
    %c0_i32_0 = arith.constant 0 : i32
    %c0_i32_1 = arith.constant 0 : i32
    return %c0_i32, %c0_i32_0 : i32, i32
  }
  func.func @transform_5(%arg0: i32) -> (i32, i32) {
    %c0_i32 = arith.constant 0 : i32
    %c0_i32_0 = arith.constant 0 : i32
    %c0_i32_1 = arith.constant 0 : i32
    return %c0_i32, %c0_i32_0 : i32, i32
  }
  func.func @transform_6(%arg0: i32) -> (i32, i32) {
    %c0_i32 = arith.constant 0 : i32
    %c0_i32_0 = arith.constant 0 : i32
    %c0_i32_1 = arith.constant 0 : i32
    return %c0_i32, %c0_i32_0 : i32, i32
  }
  func.func @transform_7(%arg0: i32) -> (i32, i32) {
    %c0_i32 = arith.constant 0 : i32
    %c0_i32_0 = arith.constant 0 : i32
    %c0_i32_1 = arith.constant 0 : i32
    return %c0_i32, %c0_i32_0 : i32, i32
  }
  func.func @transform_8(%arg0: i32) -> (i32, i32) {
    %c0_i32 = arith.constant 0 : i32
    %c0_i32_0 = arith.constant 0 : i32
    %c0_i32_1 = arith.constant 0 : i32
    return %c0_i32, %c0_i32_0 : i32, i32
  }
  func.func @transform_9(%arg0: i32) -> (i32, i32) {
    %c0_i32 = arith.constant 0 : i32
    %c0_i32_0 = arith.constant 0 : i32
    return %arg0, %c0_i32 : i32, i32
  }
  func.func @transform_10(%arg0: i32) -> (i32, i32) {
    %c0_i32 = arith.constant 0 : i32
    %c0_i32_0 = arith.constant 0 : i32
    return %arg0, %c0_i32 : i32, i32
  }
}

</mosaic_0001>

<bundles_post_ra>
// kernel: simple_linear_net.1
= control target key start
LH: loop header
LB: loop body
LE: loop exit
PB: predicated region body
PF: predicated region fallthrough
CT: control target
= control target key end

     0   :  { %16 = vsyncpa [#allocation3], 0  ;;  %s845_s0 = inlined_call_operand.vmem [shape: bf16[8,64], index: 0, kind: input, shape index: {}]   ;;  %s846_s1 = inlined_call_operand.hbm [shape: bf16[64,128], index: 1, kind: input, shape index: {}]   ;;  %s847_s2 = inlined_call_operand.vmem [shape: f32[1,128], index: 2, kind: input, shape index: {}]   ;;  %s848_s3 = inlined_call_operand.hbm [shape: bf16[128,128], index: 3, kind: input, shape index: {}]   ;;  %s849_s4 = inlined_call_operand.vmem [shape: f32[1,128], index: 4, kind: input, shape index: {}]   ;;  %s850_s5 = inlined_call_operand.hbm [shape: bf16[128,128], index: 5, kind: input, shape index: {}]   ;;  %s851_s6 = inlined_call_operand.vmem [shape: f32[1,128], index: 6, kind: input, shape index: {}]   ;;  %s852_s7 = inlined_call_operand.hbm [shape: bf16[128,128], index: 7, kind: input, shape index: {}]   ;;  %s853_s8 = inlined_call_operand.vmem [shape: f32[1,128], index: 8, kind: input, shape index: {}]   ;;  %s854_s9 = inlined_call_operand.hbm [shape: f32[8,32], index: 9, kind: output, shape index: {0}]   ;;  %s855_s10 = inlined_call_operand.hbm [shape: f32[8,10], index: 10, kind: output, shape index: {1}]  }
   0x1   :  { %17 = vsyncpa [#allocation6], 0 }
   0x2   :  { %18 = vsyncpa [#allocation9], 0 }
   0x3   :  { %19 = vsyncpa [#allocation4], 0 }
   0x4   :  { %20 = vsyncpa [#allocation12], 0  ;;  %s42_s15 = sshll.u32 %s848_s3, 4  ;;  %s749_s16 = smov [#allocation5]   ;;  %s43_s15 = int_to_ptr.hbm [resolvable:$true] %s42_s15 }
   0x5   :  { %s44_s17 = sshll.u32 %s749_s16, 4  ;;  %s27_s20 = sshll.u32 %s846_s1, 4  ;;  %s45_s17 = int_to_ptr.vmem [resolvable:$true] %s44_s17  ;;  %s28_s20 = int_to_ptr.hbm [resolvable:$true] %s27_s20 }
   0x6   :  { %s750_s21 = smov 64   ;;  %s751_s22 = smov 4  }
   0x7   :  { %50 = dma.hbm_to_vmem [thread:$0]  %s43_s15, 1024, %s45_s17, [#allocation6], %s750_s21, %s750_s21, %s751_s22  }
   0x8   :  { %s752_s23 = smov [#allocation2]   ;;  %s57_s27 = sshll.u32 %s850_s5, 4  ;;  %s58_s27 = int_to_ptr.hbm [resolvable:$true] %s57_s27 }
   0x9   :  { %s29_s24 = sshll.u32 %s752_s23, 4  ;;  %s72_s29 = sshll.u32 %s852_s7, 4  ;;  %s30_s24 = int_to_ptr.vmem [resolvable:$true] %s29_s24  ;;  %s73_s29 = int_to_ptr.hbm [resolvable:$true] %s72_s29 }
   0xa   :  { %35 = dma.hbm_to_vmem [thread:$0]  %s28_s20, 512, %s30_s24, [#allocation3], %s750_s21, %s750_s21, %s751_s22  }
   0xb   :  { %s753_s30 = smov [#allocation7]   ;;  %s754_s1 = smov [#allocation8]  }
   0xc   :  { %s59_s11 = sshll.u32 %s753_s30, 4  ;;  %s74_s12 = sshll.u32 %s754_s1, 4  ;;  %s60_s11 = int_to_ptr.vmem [resolvable:$true] %s59_s11  ;;  %s75_s12 = int_to_ptr.vmem [resolvable:$true] %s74_s12 }
   0xd   :  { %65 = dma.hbm_to_vmem [thread:$0]  %s58_s27, 1024, %s60_s11, [#allocation6], %s750_s21, %s750_s21, %s751_s22  }
   0xe   :  { %80 = dma.hbm_to_vmem [thread:$0]  %s73_s29, 1024, %s75_s12, [#allocation9], %s750_s21, %s750_s21, %s751_s22  }
   0xf   :  { %739 = dma.done.wait [#allocation3], 512  }
  0x10   :  { %740 = vsyncadd [#allocation3], 4294966784 }
  0x11   :  { %741 = dma.done.wait [#allocation6], 2048  }
  0x12   :  { %742 = vsyncadd [#allocation6], 4294965248 }
  0x13   :  { %743 = dma.done.wait [#allocation9], 1024  }
  0x14   :  { %744 = vsyncadd [#allocation9], 4294966272  ;;  %v558_v0 = vld [vmem:[#allocation2 + $0x18] sm:$0xff]  ;;  %v557_v2 = vld [vmem:[#allocation2 + $0x10] sm:$0xff]  ;;  %vm137_vm0 = vcmask 523264   ;;  %vm155_vm1 = vcmask 261120  }
  0x15   :  { %v566_v1 = vld [vmem:[#allocation5 + $0x38] sm:$0xff]  ;;  %145 = vmatpush.bf16.msra.mxu0 %v558_v0  ;;  %v565_v3 = vld [vmem:[#allocation5 + $0x30] sm:$0xff]  ;;  %v556_v4 = vld [vmem:[#allocation2 + $0x8] sm:$0xff]  ;;  %s414_s20 = sshll.u32 %s854_s9, 4  ;;  %s425_s26 = sshll.u32 %s855_s10, 4  ;;  %vm405_vm2 = vcmask 80896   ;;  %s415_s20 = int_to_ptr.hbm [resolvable:$true] %s414_s20  ;;  %s426_s26 = int_to_ptr.hbm [resolvable:$true] %s425_s26 }
  0x16   :  { %226 = vmatpush.bf16.msra.mxu1 %v566_v1  ;;  %v564_v5 = vld [vmem:[#allocation5 + $0x28] sm:$0xff]  ;;  %v555_v6 = vld [vmem:[#allocation2] sm:$0xff]  ;;  %v562_v9 = vld [vmem:[#allocation5 + $0x18] sm:$0xff] }
  0x17   :  { %v563_v7 = vld [vmem:[#allocation5 + $0x20] sm:$0xff]  ;;  %v561_v10 = vld [vmem:[#allocation5 + $0x10] sm:$0xff]  ;;  %v560_v11 = vld [vmem:[#allocation5 + $0x8] sm:$0xff] }
  0x18   :  { %v100_v8 = vld [vmem:[%s845_s0] sm:$0xf]  ;;  %v574_v13 = vld [vmem:[#allocation7 + $0x38] sm:$0xff]  ;;  %v573_v14 = vld [vmem:[#allocation7 + $0x30] sm:$0xff] }
  0x19   :  { %146 = vmatpush.bf16.msra.mxu0 %v557_v2  ;;  %v559_v12 = vld [vmem:[#allocation5] sm:$0xff]  ;;  %309 = vmatpush.bf16.msra.mxu2 %v574_v13  ;;  %v572_v15 = vld [vmem:[#allocation7 + $0x28] sm:$0xff]  ;;  %v570_v17 = vld [vmem:[#allocation7 + $0x18] sm:$0xff] }
  0x1a   :  { %227 = vmatpush.bf16.msra.mxu1 %v565_v3  ;;  %v571_v16 = vld [vmem:[#allocation7 + $0x20] sm:$0xff]  ;;  %v569_v18 = vld [vmem:[#allocation7 + $0x10] sm:$0xff]  ;;  %v568_v25 = vld [vmem:[#allocation7 + $0x8] sm:$0xff] }
  0x1b   :  { %v591_v19 = vld [vmem:[%s847_s2] ss:$0 sm:$0xff]  ;;  %v582_v27 = vld [vmem:[#allocation8 + $0x38] sm:$0xff]  ;;  %v581_v28 = vld [vmem:[#allocation8 + $0x30] sm:$0xff] }
  0x1c   :  { %v567_v26 = vld [vmem:[#allocation7] sm:$0xff]  ;;  %392 = vmatpush.bf16.msra.mxu3 %v582_v27  ;;  %v580_v29 = vld [vmem:[#allocation8 + $0x28] sm:$0xff]  ;;  %v578_v31 = vld [vmem:[#allocation8 + $0x18] sm:$0xff] }
  0x1d   :  { %147 = vmatpush.bf16.msra.mxu0 %v556_v4  ;;  %310 = vmatpush.bf16.msra.mxu2 %v573_v14  ;;  %v579_v30 = vld [vmem:[#allocation8 + $0x20] sm:$0xff]  ;;  %v577_v32 = vld [vmem:[#allocation8 + $0x10] sm:$0xff]  ;;  %v576_v39 = vld [vmem:[#allocation8 + $0x8] sm:$0xff] }
  0x1e   :  { %228 = vmatpush.bf16.msra.mxu1 %v564_v5  ;;  %v592_v33 = vld [vmem:[%s849_s4] ss:$0 sm:$0xff]  ;;  %s755_s4 = smov [#allocation10]  }
  0x1f   :  { %v575_v40 = vld [vmem:[#allocation8] sm:$0xff]  ;;  %s412_s17 = sshll.u32 %s755_s4, 4  ;;  %s413_s17 = int_to_ptr.vmem [resolvable:$true] %s412_s17 }
  0x20   :  { %393 = vmatpush.bf16.msra.mxu3 %v581_v28  ;;  %v593_v41 = vld [vmem:[%s851_s6] ss:$0 sm:$0xff]  ;;  %s756_s6 = smov [#allocation11]  }
  0x21   :  { %148 = vmatpush.bf16.msra.mxu0 %v555_v6  ;;  %311 = vmatpush.bf16.msra.mxu2 %v572_v15  ;;  %v594_v47 = vld [vmem:[%s853_s8] ss:$0 sm:$0xff]  ;;  %s423_s23 = sshll.u32 %s756_s6, 4  ;;  %s424_s23 = int_to_ptr.vmem [resolvable:$true] %s423_s23 }
  0x22   :  { %229 = vmatpush.bf16.msra.mxu1 %v563_v7 }
  0x24   :  { %458 = vmatmul.msk.bf16.vlgmr.msra.gmra.mxu0 %vm137_vm0, %v100_v8  ;;  %394 = vmatpush.bf16.msra.mxu3 %v580_v29 }
  0x25   :  { %312 = vmatpush.bf16.msra.mxu2 %v571_v16 }
  0x26   :  { %230 = vmatpush.bf16.msra.mxu1 %v562_v9 }
  0x28   :  { %395 = vmatpush.bf16.msra.mxu3 %v579_v30 }
  0x29   :  { %313 = vmatpush.bf16.msra.mxu2 %v570_v17 }
  0x2a   :  { %231 = vmatpush.bf16.msra.mxu1 %v561_v10 }
  0x2c   :  { %396 = vmatpush.bf16.msra.mxu3 %v578_v31 }
  0x2d   :  { %314 = vmatpush.bf16.msra.mxu2 %v569_v18 }
  0x2e   :  { %232 = vmatpush.bf16.msra.mxu1 %v560_v11 }
  0x30   :  { %397 = vmatpush.bf16.msra.mxu3 %v577_v32 }
  0x31   :  { %315 = vmatpush.bf16.msra.mxu2 %v568_v25 }
  0x32   :  { %233 = vmatpush.bf16.msra.mxu1 %v559_v12 }
  0x34   :  { %398 = vmatpush.bf16.msra.mxu3 %v576_v39 }
  0x35   :  { %316 = vmatpush.bf16.msra.mxu2 %v567_v26 }
  0x38   :  { %399 = vmatpush.bf16.msra.mxu3 %v575_v40 }
  0xa1   :  { %v150_v20 = vpop.f32.mrf.mxu0 }
  0xa2   :  { %v151_v21 = vadd.f32 %v591_v19, %v150_v20 }
  0xa4   :  { %v154_v22 = vmax.f32 %v151_v21, 0.0 }
  0xa6   :  { %v157_v23 = vpack.c.bf16 %v154_v22, %v154_v22  ;;  %156 = vst.msk [vmem:[#allocation10] sm:$0xff] %vm155_vm1, %v154_v22 }
  0xa7   :  { %417 = dma.vmem_to_hbm [thread:$0]  %s413_s17, 128, %s415_s20, [#allocation4]  }
  0xa8   :  { %234 = vmatmul.bf16.vlgmr.msra.gmra.mxu1 %v157_v23 }
  0xa9   :  { %v152_v24 = vpop.f32.mrf.mxu0 }
 0x125   :  { %v235_v34 = vpop.f32.mrf.mxu1 }
 0x126   :  { %v236_v35 = vadd.f32 %v592_v33, %v235_v34 }
 0x128   :  { %v239_v36 = vmax.f32 %v236_v35, 0.0 }
 0x12a   :  { %v240_v37 = vpack.c.bf16 %v239_v36, %v239_v36 }
 0x12c   :  { %317 = vmatmul.bf16.vlgmr.msra.gmra.mxu2 %v240_v37 }
 0x12d   :  { %v237_v38 = vpop.f32.mrf.mxu1 }
 0x1af   :  { %v318_v42 = vpop.f32.mrf.mxu2 }
 0x1b0   :  { %v319_v43 = vadd.f32 %v593_v41, %v318_v42 }
 0x1b2   :  { %v322_v44 = vmax.f32 %v319_v43, 0.0 }
 0x1b4   :  { %v323_v45 = vpack.c.bf16 %v322_v44, %v322_v44 }
 0x1b6   :  { %400 = vmatmul.bf16.vlgmr.msra.gmra.mxu3 %v323_v45 }
 0x1b7   :  { %v320_v46 = vpop.f32.mrf.mxu2 }
 0x239   :  { %v401_v48 = vpop.f32.mrf.mxu3 }
 0x23a   :  { %v402_v49 = vadd.f32 %v594_v47, %v401_v48 }
 0x23c   :  { %406 = vst.msk [vmem:[#allocation11] sm:$0xff] %vm405_vm2, %v402_v49 }
 0x23d   :  { %428 = dma.vmem_to_hbm [thread:$0]  %s424_s23, 128, %s426_s26, [#allocation12]  }
 0x241   :  { %v403_v50 = vpop.f32.mrf.mxu3 }
 0x242   :  { %745 = dma.done.wait [#allocation4], 128  }
 0x243   :  { %746 = vsyncadd [#allocation4], 4294967168 }
 0x244   :  { %747 = dma.done.wait [#allocation12], 128  }
 0x245   :  { %748 = vsyncadd [#allocation12], 4294967168 }
 0x246   :  { %437 = vsyncpa [#allocation3], 1 }
 0x247   :  { %438 = vsyncpa [#allocation6], 1 }
 0x248   :  { %439 = vsyncpa [#allocation9], 1 }
 0x249   :  { %440 = vsyncpa [#allocation4], 1 }
 0x24a   :  { %441 = vsyncpa [#allocation12], 1 }

</bundles_post_ra>
